<compile_context>
chip_gen: v7x
topology: tpu7x:2x2x1
jax: 0.10.0
libtpu: 0.0.40
codegen_flags: <defaults>
</compile_context>

<pallas_src>
import math

import jax
import jax.numpy as jnp
from jax.experimental import pallas as pl
from jax.experimental.pallas import tpu as pltpu


def _round_up(x, m):
    return ((x + m - 1) // m) * m


def _round_down(x, m):
    return (x // m) * m


def _pos_emb_kernel(x_ref, freqs_ref, phase_ref, o_ref):
    # x_ref:     (tile_rows, 1)         f32 positions
    # freqs_ref: (1, tile_cols)         f32, duplicated-freq layout
    # phase_ref: (1, tile_cols)         f32, 0 for cos lanes, -pi/2 for sin lanes
    # o_ref:     (tile_rows, tile_cols) out_dtype
    theta = x_ref[...] * freqs_ref[...] + phase_ref[...]
    o_ref[...] = jnp.cos(theta).astype(o_ref.dtype)


def positional_embedding(x, num_channels, max_positions=5000, endpoint=False,
                         *, out_dtype=jnp.float32,
                         vmem_budget_bytes=12 * 1024 * 1024):
    """x: [N] positions -> [N, num_channels] embedding (cos | sin)."""
    assert num_channels % 2 == 0 and num_channels >= 2, "num_channels must be even"
    half = num_channels // 2
    assert not (endpoint and half <= 1), "endpoint=True requires num_channels >= 4"

    n = x.shape[0]
    x2d = x.astype(jnp.float32).reshape(n, 1)

    # freqs with the exact same pow() math as the PyTorch module.
    denom = jnp.float32(half - (1 if endpoint else 0))
    freqs = jnp.arange(half, dtype=jnp.float32) / denom
    freqs = (jnp.float32(1.0) / jnp.float32(max_positions)) ** freqs
    freqs_full = jnp.concatenate([freqs, freqs]).reshape(1, num_channels)
    phase = jnp.concatenate([
        jnp.zeros((half,), jnp.float32),
        jnp.full((half,), -math.pi / 2, dtype=jnp.float32),
    ]).reshape(1, num_channels)

    # --- channel tile: multiple of 128, <= 512, dividing C; else full width ---
    tc = num_channels
    if num_channels > 512:
        for cand in (512, 256, 128):
            if num_channels % cand == 0:
                tc = cand
                break

    # --- row tile from a VMEM budget (double-buffered output + x blocks) ---
    out_itemsize = jnp.dtype(out_dtype).itemsize
    per_row_bytes = 2 * (tc * out_itemsize + 4)          # double-buffered
    tile = vmem_budget_bytes // per_row_bytes
    tile = min(tile, 4096)                                # keep steps reasonable
    tile = max(_round_down(tile, 8), 8)
    tile = min(tile, _round_up(n, 8))                     # don't overshoot array
    if n >= 16:
        # >=2 row steps so the "parallel" row axis shards across v7x's two
        # TensorCores (no-op on v5e/v6e single-core chips).
        tile = min(tile, _round_up(pl.cdiv(n, 2), 8))
    tile = max(_round_down(tile, 8), 8)

    grid = (pl.cdiv(n, tile), num_channels // tc)

    cost = pl.CostEstimate(
        flops=2 * n * num_channels,                       # mul + add per element
        transcendentals=n * num_channels,                 # one cos per element
        bytes_accessed=n * 4 + 2 * num_channels * 4 + n * num_channels * out_itemsize,
    )

    return pl.pallas_call(
        _pos_emb_kernel,
        out_shape=jax.ShapeDtypeStruct((n, num_channels), out_dtype),
        grid=grid,
        in_specs=[
            pl.BlockSpec((tile, 1), lambda i, j: (i, 0)),   # positions, row-tiled
            pl.BlockSpec((1, tc), lambda i, j: (0, j)),     # freqs_full, col-tiled
            pl.BlockSpec((1, tc), lambda i, j: (0, j)),     # phase, col-tiled
        ],
        out_specs=pl.BlockSpec((tile, tc), lambda i, j: (i, j)),
        compiler_params=pltpu.CompilerParams(
            dimension_semantics=("parallel", "parallel"),
        ),
        cost_estimate=cost,
    )(x2d, freqs_full, phase)


def _reference(x, num_channels, max_positions=5000, endpoint=False):
    half = num_channels // 2
    freqs = jnp.arange(half, dtype=jnp.float32)
    freqs = freqs / jnp.float32(half - (1 if endpoint else 0))
    freqs = (jnp.float32(1.0) / jnp.float32(max_positions)) ** freqs
    prod = jnp.outer(x.astype(jnp.float32), freqs)
    return jnp.concatenate([jnp.cos(prod), jnp.sin(prod)], axis=1)


if __name__ == "__main__":
    key = jax.random.PRNGKey(0)
    num_channels = 32      # -> 16 cos + 16 sin features
    seq = 16               # number of positions (e.g. a batch of timesteps)

    # deterministic "timestep"-like positions in [0, 1000)
    x = jax.random.uniform(key, (seq,), dtype=jnp.float32) * 1000.0

    out = positional_embedding(x, num_channels)
    out = jax.block_until_ready(out)

    ref = _reference(x, num_channels)
    assert out.shape == (seq, num_channels), out.shape
    # cos half is bit-matched in argument math; sin half uses cos(theta - pi/2),
    # which differs from jnp.sin(theta) by ~|theta|*2^-24 (~6e-5 at theta~1e3).
    # f32 trig of ~1e3-radian arguments carries similar absolute error anyway.
    assert jnp.allclose(out, ref, atol=1e-3, rtol=1e-4), (
        float(jnp.max(jnp.abs(out - ref)))
    )
    print("KERNEL_OK")
</pallas_src>

<mosaic_0001>
module attributes {stable_mosaic.version = 11 : i64} {
  func.func @_pos_emb_kernel(%arg0: i32, %arg1: i32, %arg2: memref<8x1xf32, #tpu.memory_space<vmem>>, %arg3: memref<1x32xf32, #tpu.memory_space<vmem>>, %arg4: memref<1x32xf32, #tpu.memory_space<vmem>>, %arg5: memref<8x32xf32, #tpu.memory_space<vmem>>) attributes {dimension_semantics = [#tpu.dimension_semantics<parallel>, #tpu.dimension_semantics<parallel>], iteration_bounds = array<i64: 2, 1>, scalar_prefetch = 0 : i64, scratch_operands = 0 : i64, tpu.core_type = #tpu.core_type<tc>, window_params = [{transform_indices = @transform_0, window_bounds = array<i64: 8, 1>}, {transform_indices = @transform_1, window_bounds = array<i64: 1, 32>}, {transform_indices = @transform_2, window_bounds = array<i64: 1, 32>}, {transform_indices = @transform_3, window_bounds = array<i64: 8, 32>}]} {
    %c0 = arith.constant 0 : index
    %c0_0 = arith.constant 0 : index
    %0 = vector.load %arg2[%c0, %c0_0] : memref<8x1xf32, #tpu.memory_space<vmem>>, vector<8x1xf32>
    %c0_1 = arith.constant 0 : index
    %c0_2 = arith.constant 0 : index
    %1 = vector.load %arg3[%c0_1, %c0_2] : memref<1x32xf32, #tpu.memory_space<vmem>>, vector<1x32xf32>
    %2 = vector.broadcast %0 : vector<8x1xf32> to vector<8x32xf32>
    %3 = vector.broadcast %1 : vector<1x32xf32> to vector<8x32xf32>
    %4 = arith.mulf %2, %3 : vector<8x32xf32>
    %c0_3 = arith.constant 0 : index
    %c0_4 = arith.constant 0 : index
    %5 = vector.load %arg4[%c0_3, %c0_4] : memref<1x32xf32, #tpu.memory_space<vmem>>, vector<1x32xf32>
    %6 = vector.broadcast %5 : vector<1x32xf32> to vector<8x32xf32>
    %7 = arith.addf %4, %6 : vector<8x32xf32>
    %8 = math.cos %7 : vector<8x32xf32>
    %c0_5 = arith.constant 0 : index
    %c0_6 = arith.constant 0 : index
    %9 = vector.load %arg5[%c0_5, %c0_6] : memref<8x32xf32, #tpu.memory_space<vmem>>, vector<8x32xf32>
    tpu.vector_store %arg5[%c0_5, %c0_6], %8 {strides = array<i32>} : memref<8x32xf32, #tpu.memory_space<vmem>>, vector<8x32xf32>,
    return
  }
  func.func @transform_0(%arg0: i32, %arg1: i32) -> (i32, i32) {
    %c0_i32 = arith.constant 0 : i32
    %c0_i32_0 = arith.constant 0 : i32
    return %arg0, %c0_i32 : i32, i32
  }
  func.func @transform_1(%arg0: i32, %arg1: i32) -> (i32, i32) {
    %c0_i32 = arith.constant 0 : i32
    %c0_i32_0 = arith.constant 0 : i32
    return %c0_i32, %arg1 : i32, i32
  }
  func.func @transform_2(%arg0: i32, %arg1: i32) -> (i32, i32) {
    %c0_i32 = arith.constant 0 : i32
    %c0_i32_0 = arith.constant 0 : i32
    return %c0_i32, %arg1 : i32, i32
  }
  func.func @transform_3(%arg0: i32, %arg1: i32) -> (i32, i32) {
    %c0_i32 = arith.constant 0 : i32
    return %arg0, %arg1 : i32, i32
  }
}

</mosaic_0001>

<bundles_post_ra>
// kernel: tpu_custom_call.1
= control target key start
LH: loop header
LB: loop body
LE: loop exit
PB: predicated region body
PF: predicated region fallthrough
CT: control target
= control target key end

     0   :  { %8 = vsyncpa [#allocation3], 0  ;;  %s779_s0 = inlined_call_operand.vmem [shape: f32[16,1], index: 0, kind: input, shape index: {}]   ;;  %s780_s1 = inlined_call_operand.vmem [shape: f32[1,32], index: 1, kind: input, shape index: {}]   ;;  %s781_s2 = inlined_call_operand.vmem [shape: f32[1,32], index: 2, kind: input, shape index: {}]   ;;  %s782_s3 = inlined_call_operand.hbm [shape: f32[16,32], index: 3, kind: output, shape index: {}]  }
   0x1   :  { %10 = vsyncpa [#allocation3 + $0x1], 0  ;;  %s640_s12 = smov 0   ;;  %s642_s13 = smov 0  }
   0x2   :  { %s644_s14 = smov 0   ;;  %s646_s15 = smov 0  }
   0x3   :  { %s648_s16 = smov 0   ;;  %s650_s17 = smov 0  }
   0x4 LB: > { %s442_s18 = sadd.s32 4294967295, %s610_s17   ;;  %s443_s19 = sadd.s32 4294967294, %s610_s17   ;;  %s610_s17 = sphi %s650_s17, %s16_s17   ;;  %s606_s16 = sphi %s648_s16, %s789_s16   ;;  %s602_s15 = sphi %s646_s15, %s788_s15   ;;  %s598_s14 = sphi %s644_s14, %s787_s14   ;;  %s594_s13 = sphi %s642_s13, %s786_s13   ;;  %s590_s12 = sphi %s640_s12, %s785_s12  }
   0x5   : > { %s28_s20 = sadd.s32 1, %s606_s16  ;;  %s115_s21 = sadd.s32 1, %s598_s14 }
   0x6   : > { %p30_p0 = scmp.ge.s32.totalorder %s28_s20, 2  ;;  %p125_p1 = scmp.ne.s32.totalorder %s598_s14, %s594_s13 }
   0x7   : > { %p126_p2 = scmp.eq.s32.totalorder %s442_s18, 1  ;;  %p131_p3 = scmp.ne.s32.totalorder %s594_s13, %s590_s12 }
   0x8   : > { %s791_s20 = smov (%p30_p0, %s28_s20), 0  ;;  %p132_p5 = scmp.eq.s32.totalorder %s443_s19, 1 }
   0x9   : > { %p680_p4 = por %p126_p2, %p125_p1  ;;  %s110_s23 = ssub.s32 %s606_s16, %s791_s20 }
   0xa   : > { %p448_p6 = scmp.ge.s32.totalorder %s610_s17, 1  ;;  %p113_p7 = scmp.eq.s32.totalorder %s110_s23, 0 }
   0xb   : > { %p687_p8 = por %p132_p5, %p131_p3  ;;  %p169_p9 = scmp.lt.s32.totalorder %s610_s17, 3 }
   0xc   : > { %s693_s25 = scalar_select %p113_p7, %s598_s14, %s115_s21  }
   0xd   : > { %p170_p10 = pnand %p448_p6, %p169_p9 }
   0xe   : > { %p198_p11 = scmp.lt.s32.totalorder (!%p170_p10), %s602_s15, 1  ;;  %v612_v0 = vmov (!%p170_p10), 0   ;;  %v451_v2 = vld [vmem:[%s780_s1] ss:$0 sm:$0xff] (!%p170_p10)  ;;  %v613_v17 = vmov (!%p170_p10), 683565275  }
   0xf   : > { %173 = sbr.rel (%p170_p10) target bundleno = 252 (0xfc), region = 32  ;;  %527 = vset.pattern.permute.xlu0 (!%p170_p10), %v612_v0  ;;  %v452_v3 = vld [vmem:[%s781_s2] ss:$0 sm:$0xff] (!%p170_p10)  ;;  %v614_v19 = vmov (!%p170_p10), 2475754826   ;;  %s195_s8 = sand.u32 (!%p170_p10), 1, %s594_s13  }
  0x10   : > { %v615_v22 = vmov (!%p170_p10), 2131351028   ;;  %v616_v25 = vmov (!%p170_p10), 2102212464   ;;  %v617_v28 = vmov (!%p170_p10), 920167782  }
  0x11   : > { %v618_v31 = vmov (!%p170_p10), 1326507024   ;;  %s449_s9 = sshll.u32 (!%p170_p10), %s195_s8, 3  ;;  %s458_s10 = sshll.u32 (!%p170_p10), %s602_s15, 7  ;;  %vm333_vm12 = vcmask (!%p170_p10), 261120  }
  0x12   : > { %s197_s11 = scalar_lea.vmem (!%p170_p10), [#allocation2], %s449_s9  ;;  %s732_s23 = scalar_lea.hbm (!%p170_p10), %s782_s3, %s458_s10 }
  0x13   : > { %s350_s18 = sshll.u32 (!%p170_p10), %s197_s11, 4  ;;  %s734_s18 = int_to_ptr.vmem [resolvable:$true] %s350_s18 }
  0x16   : > { %s199_s26 = scalar_select %p198_p11, %s602_s15, 1 }
  0x17   : > { %s336_s15 = scalar_lea.sflag [#allocation3], %s195_s8 }
  0x18   : > { %s450_s27 = sshll.u32 %s199_s26, 3  ;;  %s532_s26 = scalar_lea.vmem %s734_s18, 128 }
  0x19   : > { %s201_s30 = scalar_lea.vmem %s779_s0, %s450_s27  ;;  %p533_p12 = scmp.ne.s32.totalorder %s734_s18, %s532_s26 }
  0x1a   : > { %v208_v1 = vld [vmem:[%s201_s30] sm:$0xff]  ;;  %s619_s27 = smov [#allocation2]  }
  0x1b   : > { %212 = vperm.xlu0 %527, %v208_v1   ;;  %p534_p13 = pnand %p533_p12, %p680_p4  ;;  %s536_s28 = sshll.u32 %s619_s27, 4  ;;  %s537_s28 = int_to_ptr.vmem [resolvable:$false] %s536_s28 }
  0x1c   : > { %s538_s29 = scalar_lea.vmem %s537_s28, 256  ;;  %p539_p1 = scmp.lt.s32.totalorder %s734_s18, %s537_s28 }
  0x1d   : > { %p535_p0 = pneg %p534_p13  ;;  %p540_p2 = scmp.lt.s32.totalorder %s538_s29, %s532_s26 }
  0x1f   : > { %p541_p3 = por %p540_p2, %p539_p1 }
  0x21   : > { %p542_p5 = pnand %p541_p3, %p535_p0 }
  0x9a   : > { %v213_v4 = vpop.permute.xlu0 %212 }
  0x9b   : > { %v221_v5 = vmul.f32 %v451_v2, %v213_v4 }
  0x9d   : > { %v706_v6 = vadd.f32 %v452_v3, %v221_v5 }
  0x9f   : > { %v233_v7 = vand.u32 2139095040, %v706_v6  ;;  %v230_v11 = vand.u32 2147483647, %v706_v6  ;;  %vm232_vm7 = vcmp.lt.s32.totalorder %v706_v6, 0  ;;  %vm322_vm13 = vweird.f32 %v706_v6 }
  0xa1   : > { %v234_v8 = vshrl.u32 %v233_v7, 23  ;;  %v237_v14 = vand.u32 8388607, %v230_v11  ;;  %vm231_vm8 = vcmp.le.f32.partialorder %v230_v11, 0.7853982 }
  0xa3   : > { %v453_v9 = vadd.s32 4294967169, %v234_v8  ;;  %v238_v33 = vor.u32 8388608, %v237_v14 }
  0xa5   : > { %v240_v10 = vadd.s32 1, %v453_v9  ;;  %v278_v47 = vshll.u32 %v238_v33, 8 }
  0xa7   : > { %vm241_vm0 = vcmp.gt.s32.totalorder %v240_v10, 0 }
  0xa8   : > { %v242_v12 = vsel %vm241_vm0, %v240_v10, 0 }
  0xa9   : > { %v244_v13 = vand.u32 31, %v242_v12  ;;  %v243_v16 = vshrl.u32 %v242_v12, 5 }
  0xab   : > { %v245_v15 = vsub.s32 32, %v244_v13  ;;  %v247_v18 = vshll.u32 %v613_v17, %v244_v13  ;;  %v250_v20 = vshll.u32 %v614_v19, %v244_v13  ;;  %v253_v24 = vshll.u32 %v615_v22, %v244_v13 }
  0xac   : > { %v256_v27 = vshll.u32 %v616_v25, %v244_v13  ;;  %v259_v30 = vshll.u32 %v617_v28, %v244_v13  ;;  %vm262_vm1 = vcmp.lt.s32.totalorder %v243_v16, 1  ;;  %vm265_vm2 = vcmp.lt.s32.totalorder %v243_v16, 4 }
  0xad   : > { %v248_v21 = vshrl.u32 %v614_v19, %v245_v15  ;;  %v251_v23 = vshrl.u32 %v615_v22, %v245_v15  ;;  %v254_v26 = vshrl.u32 %v616_v25, %v245_v15  ;;  %v257_v29 = vshrl.u32 %v617_v28, %v245_v15 }
  0xae   : > { %v260_v32 = vshrl.u32 %v618_v31, %v245_v15  ;;  %v246_v42 = vshrl.u32 %v613_v17, %v245_v15  ;;  %vm264_vm3 = vcmp.lt.s32.totalorder %v243_v16, 3  ;;  %vm263_vm4 = vcmp.lt.s32.totalorder %v243_v16, 2 }
  0xaf   : > { %v249_v34 = vor.u32 %v248_v21, %v247_v18  ;;  %v252_v35 = vor.u32 %v251_v23, %v250_v20  ;;  %v255_v36 = vor.u32 %v254_v26, %v253_v24  ;;  %v258_v37 = vor.u32 %v257_v29, %v256_v27 }
  0xb0   : > { %v261_v38 = vor.u32 %v260_v32, %v259_v30 }
  0xb1   : > { %v267_v39 = vsel %vm265_vm2, %v255_v36, 2102212464  ;;  %v270_v40 = vsel %vm262_vm1, %v249_v34, %v252_v35  ;;  %v274_v41 = vsel %vm262_vm1, %v252_v35, %v255_v36  ;;  %v271_v43 = vsel %vm265_vm2, %v258_v37, 920167782 }
  0xb2   : > { %v275_v44 = vsel %vm265_vm2, %v261_v38, 1326507024  ;;  %v272_v45 = vsel %vm264_vm3, %v255_v36, %v271_v43  ;;  %v266_v48 = vsel %vm262_vm1, %v246_v42, %v249_v34  ;;  %v268_v49 = vsel %vm264_vm3, %v252_v35, %v267_v39 }
  0xb3   : > { %v276_v46 = vsel %vm264_vm3, %v258_v37, %v275_v44  ;;  %v273_v50 = vsel %vm263_vm4, %v270_v40, %v272_v45  ;;  %v269_v56 = vsel %vm263_vm4, %v266_v48, %v268_v49 }
  0xb4   : > { %v277_v51 = vsel %vm263_vm4, %v274_v41, %v276_v46  ;;  %v715_v54 = vmul.u32.u64.low %v278_v47, %v273_v50  ;;  %v716_v55 = vmul.u32.u64.high %v278_v47, %v273_v50, %v715_v54  ;;  %v285_v58 = vmul.u32 %v278_v47, %v269_v56 }
  0xb5   : > { %v712_v52 = vmul.u32.u64.low %v278_v47, %v277_v51  ;;  %v713_v53 = vmul.u32.u64.high %v278_v47, %v277_v51, %v712_v52 }
  0xb6   : > { %v288_v57 = vadd.s32 1, %v716_v55 }
  0xb7   : > { %vm287_vm5 = vc.u32 %v713_v53, %v715_v54  ;;  %v286_v7 = vadd.s32 %v715_v54, %v713_v53 }
  0xb8   : > { %v289_v59 = vsel %vm287_vm5, %v288_v57, %v716_v55 }
  0xb9   : > { %v290_v60 = vadd.s32 %v289_v59, %v285_v58 }
  0xbb   : > { %v291_v61 = vadd.s32 536870912, %v290_v60 }
  0xbd   : > { %v292_v62 = vshrl.u32 %v291_v61, 30 }
  0xbf   : > { %v293_v63 = vshll.u32 %v292_v62, 30  ;;  %v316_v22 = vsub.s32 4, %v292_v62 }
  0xc1   : > { %v294_v0 = vsub.s32 %v290_v60, %v293_v63  ;;  %v317_v24 = vsel %vm232_vm7, %v316_v22, %v292_v62 }
  0xc2   : > { %v319_v25 = vsel %vm231_vm8, 0, %v317_v24 }
  0xc3   : > { %v296_v1 = vsub.s32 0, %v294_v0  ;;  %v323_v26 = vand.u32 3, %v319_v25 }
  0xc5   : > { %v454_v2 = vmin.u32 %v296_v1, %v294_v0  ;;  %vm328_vm9 = vcmp.eq.s32.totalorder %v323_v26, 2  ;;  %vm325_vm10 = vcmp.eq.s32.totalorder %v323_v26, 0  ;;  %vm324_vm11 = vcmp.lt.s32.totalorder %v323_v26, 2 }
  0xc7   : > { %v298_v3 = vclz %v454_v2 }
  0xc9   : > { %v455_v4 = vadd.s32 4294967294, %v298_v3 }
  0xcb   : > { %vm456_vm6 = vcmp.lt.s32.totalorder %v455_v4, 0 }
  0xcc   : > { %v301_v5 = vsel %vm456_vm6, 0, %v455_v4 }
  0xcd   : > { %v302_v8 = vsub.s32 32, %v301_v5  ;;  %v306_v9 = vsub.s32 4294967266, %v301_v5  ;;  %v303_v10 = vshll.u32 %v294_v0, %v301_v5 }
  0xcf   : > { %v304_v12 = vshrl.u32 %v286_v7, %v302_v8  ;;  %v307_v13 = vadd.s32 127, %v306_v9 }
  0xd1   : > { %v305_v14 = vor.u32 %v304_v12, %v303_v10  ;;  %v308_v15 = vshll.u32 %v307_v13, 23 }
  0xd3   : > { %v309_v16 = vor.u32 4788187, %v308_v15  ;;  %v312_v18 = vcvt.s32.f32 %v305_v14 }
  0xd5   : > { %v310_v17 = vand.u32 2147483647, %v309_v16 }
  0xd7   : > { %v313_v19 = vmul.f32 %v312_v18, %v310_v17 }
  0xd9   : > { %v314_v20 = vxor.u32 2147483648, %v313_v19 }
  0xdb   : > { %v315_v21 = vsel %vm232_vm7, %v314_v20, %v313_v19 }
  0xdc   : > { %v318_v23 = vsel %vm231_vm8, %v706_v6, %v315_v21 }
  0xdd   : > { %528 = vcosq.f32 %v318_v23 }
  0xde   : > { %530 = vsinq.f32 %v318_v23 }
  0xe7   : > { %v529_v27 = vpop.eup %528 }
  0xe8   : > { %v531_v28 = vpop.eup %530  ;;  %v329_v29 = vxor.u32 2147483648, %v529_v27 }
  0xe9   : > { %v326_v30 = vxor.u32 2147483648, %v531_v28 }
  0xea   : > { %v330_v11 = vsel %vm328_vm9, %v329_v29, %v531_v28 }
  0xeb   : > { %v327_v31 = vsel %vm325_vm10, %v529_v27, %v326_v30 }
  0xec   : > { %v331_v32 = vsel %vm324_vm11, %v327_v31, %v330_v11 }
  0xed   : > { %v332_v33 = vsel %vm322_vm13, nan, %v331_v32 }
  0xee   : > { %334 = vst.msk [vmem:[%s197_s11] sm:$0xff] %vm333_vm12, %v332_v33 }
  0xef   : > { %545 = shalt.err (!%p542_p5)
}
  0xf0   : > { %s546_s30 = scalar_lea.hbm %s732_s23, 128  ;;  %s550_s6 = scalar_lea.hbm %s782_s3, 256 }
  0xf1   : > { %p547_p6 = scmp.ne.s32.totalorder %s732_s23, %s546_s30  ;;  %p551_p10 = scmp.lt.u32.totalorder %s732_s23, %s782_s3 }
  0xf2   : > { %p552_p11 = scmp.lt.u32.totalorder %s550_s6, %s546_s30  ;;  %p554_p13 = scmp.lt.u32.totalorder %s546_s30, %s732_s23 }
  0xf3   : > { %p548_p7 = pnand %p547_p6, %p680_p4 }
  0xf4   : > { %p553_p12 = por %p552_p11, %p551_p10 }
  0xf5   : > { %p549_p9 = pneg %p548_p7 }
  0xf6   : > { %p555_p0 = por %p554_p13, %p553_p12 }
  0xf8   : > { %p556_p1 = pnand %p555_p0, %p549_p9 }
  0xfa   : > { %559 = shalt.err (!%p556_p1)
}
  0xfb   : > { %465 = dma.vmem_to_hbm [thread:$0]  (%p680_p4), %s734_s18, 128, %s732_s23, %s336_s15  }
  0xfc PF: > { %p471_p2 = scmp.ge.s32.totalorder %s610_s17, 2  ;;  %s362_s9 = sand.u32 1, %s590_s12  }
  0xfd   : > { %s363_s10 = scalar_lea.sflag [#allocation3], %s362_s9 }
  0xfe   : > { %p468_p3 = pnand %p471_p2, %p687_p8 }
 0x100   : > { %585 = dma.done.wait (!%p468_p3), %s363_s10, 128  }
 0x101   : > { %587 = vsyncadd (!%p468_p3), %s363_s10, 4294967168  ;;  %s16_s17 = sadd.s32 1, %s610_s17   ;;  %s785_s12 = smov %s594_s13 }
 0x102   : > { %p13_p5 = scmp.ge.s32.totalorder %s16_s17, 4   ;;  %s786_s13 = smov %s598_s14 }
 0x103   : > { %s787_s14 = smov %s693_s25  ;;  %s788_s15 = smov %s606_s16 }
 0x104   : > { %s789_s16 = smov %s791_s20  ;;  %15 = sbr.rel (!%p13_p5) target bundleno = 4 (0x4), region = 73 }
 0x10b   :  { %368 = vsyncpa [#allocation3], 1 }
 0x10c   :  { %370 = vsyncpa [#allocation3 + $0x1], 1 }

</bundles_post_ra>
